<compile_context>
chip_gen: v6e
topology: v6e:2x2x1
jax: 0.10.0
libtpu: 0.0.40
codegen_flags: <defaults>
</compile_context>

<pallas_src>
import jax
import jax.numpy as jnp
from jax.experimental import pallas as pl
from jax.experimental.pallas import tpu as pltpu

LANE = 128        # TPU lane width: feature dims padded to multiples of this
_N_CHUNK = 512    # in-kernel N tiling width (multiple of 128)
_TM_MAX = 512     # max batch-tile rows


def _round_up(n, m):
    return ((n + m - 1) // m) * m


def _cdiv(a, b):
    return -(-a // b)


# ---------------------------------------------------------------------------
# Fused kernel: x -> Linear+ReLU -> ... -> Linear  (all layers in one body)
# ---------------------------------------------------------------------------
def _fused_mlp_kernel(x_ref, *refs):
    # refs = (w1, b1, w2, b2, ..., wL, bL, o_ref)
    o_ref = refs[-1]
    wb = refs[:-1]
    n_layers = len(wb) // 2

    act_dtype = x_ref.dtype          # bf16 activations feeding the MXU
    h = x_ref[...]
    for l in range(n_layers):        # static unroll over layers
        w_ref = wb[2 * l]            # (K_pad, N_pad) bf16, VMEM-resident
        b_ref = wb[2 * l + 1]        # (1, N_pad)     f32
        np_ = w_ref.shape[1]
        last = (l == n_layers - 1)
        chunks = []
        # Static unroll over 128-aligned N chunks: keeps the f32 accumulator,
        # bias add and ReLU inside the vreg file (no VMEM spill for wide N).
        for c0 in range(0, np_, _N_CHUNK):
            c1 = min(c0 + _N_CHUNK, np_)
            acc = jnp.dot(h, w_ref[:, c0:c1],
                          preferred_element_type=jnp.float32)   # MXU, f32 acc
            acc = acc + b_ref[:, c0:c1]                          # VPU, f32
            if last:
                o_ref[:, c0:c1] = acc.astype(o_ref.dtype)        # final: no ReLU
            else:
                chunks.append(jnp.maximum(acc, 0.0).astype(act_dtype))
        if not last:
            h = chunks[0] if len(chunks) == 1 else jnp.concatenate(chunks, axis=-1)


# ---------------------------------------------------------------------------
# Parameter setup (done once, outside the hot path)
# ---------------------------------------------------------------------------
def init_mlp_params(key, input_size, hidden_size, output_size, num_layers):
    """Matches the PyTorch module: Linear(in,hid)+ReLU, (num_layers-1) x
    [Linear(hid,hid)+ReLU], Linear(hid,out). Weights stored transposed to
    [in, out], f32."""
    dims = [input_size] + [hidden_size] * num_layers + [output_size]
    params = []
    for i in range(len(dims) - 1):
        fan_in, fan_out = dims[i], dims[i + 1]
        key, kw, kb = jax.random.split(key, 3)
        bound = 1.0 / jnp.sqrt(fan_in)  # PyTorch nn.Linear default uniform bound
        w = jax.random.uniform(kw, (fan_in, fan_out), jnp.float32, -bound, bound)
        b = jax.random.uniform(kb, (fan_out,), jnp.float32, -bound, bound)
        params.append((w, b))
    return params


def pad_mlp_params(params, compute_dtype=jnp.bfloat16):
    """Zero-pad every weight to (K_pad, N_pad) multiples of 128, cast to bf16,
    and store bias pre-reshaped/padded to (1, N_pad) in f32. Zero padding is
    exact here: padded activation columns stay 0 through bias/ReLU/next matmul
    (relies on ReLU(0) == 0)."""
    padded = []
    for w, b in params:
        k, n = w.shape
        kp, np_ = _round_up(k, LANE), _round_up(n, LANE)
        w_p = jnp.zeros((kp, np_), compute_dtype).at[:k, :n].set(
            w.astype(compute_dtype))
        b_p = jnp.zeros((1, np_), jnp.float32).at[0, :n].set(b)
        padded.append((w_p, b_p))
    return padded


# ---------------------------------------------------------------------------
# Forward pass
# ---------------------------------------------------------------------------
def _vmem_cap_bytes():
    try:
        return int(0.8 * pltpu.get_tpu_info().vmem_capacity_bytes)
    except Exception:
        return 48 * 1024 * 1024   # conservative: fits v7x's 64 MiB per-TC VMEM


def fused_mlp_pallas(x, padded_params, out_features, *,
                     out_dtype=jnp.float32, return_padded=False):
    """x: [M, K] f32; padded_params from pad_mlp_params.
    Returns [M, out_features] (out_dtype) or the padded [M_pad, N_pad] slab."""
    M, K = x.shape
    compute_dtype = padded_params[0][0].dtype
    K0_pad = padded_params[0][0].shape[0]
    N_last_pad = padded_params[-1][0].shape[1]
    act_itemsize = jnp.dtype(compute_dtype).itemsize
    out_itemsize = jnp.dtype(out_dtype).itemsize

    # Resident (single-buffered) weight + bias VMEM footprint.
    wb_bytes = sum(int(w.size) * w.dtype.itemsize + int(b.size) * b.dtype.itemsize
                   for w, b in padded_params)
    cap = _vmem_cap_bytes()

    # Batch tiling: >=2 grid steps when the batch allows (feeds both v7x TCs),
    # large tiles (<=512 rows) for big batches, shrunk if VMEM would overflow.
    sub = 16 if compute_dtype == jnp.bfloat16 else 8
    tm = max(sub, min(_TM_MAX, _round_up(_cdiv(M, 2), sub)))

    def _tile_bytes(tm_):
        # x tile and out tile are double-buffered by the pipeline.
        return 2 * tm_ * K0_pad * act_itemsize + 2 * tm_ * N_last_pad * out_itemsize

    while tm > sub and wb_bytes + _tile_bytes(tm) > cap:
        tm = max(sub, _round_up(tm // 2, sub))

    need = wb_bytes + _tile_bytes(tm)
    if need > cap:
        # TODO(synk): N/K-tiled pltpu.emit_pipeline fallback with HBM-resident
        # weights for models whose resident footprint exceeds VMEM.
        raise NotImplementedError(
            f"resident-weight MLP needs {need} B of VMEM > budget {cap} B")
    vmem_limit = min(max(int(need * 1.25) + (2 << 20), 16 << 20), cap)

    M_pad = _round_up(M, tm)
    x_p = jnp.zeros((M_pad, K0_pad), compute_dtype).at[:M, :K].set(
        x.astype(compute_dtype))

    in_specs = [pl.BlockSpec((tm, K0_pad), lambda i: (i, 0))]
    inputs = [x_p]
    for (w, b) in padded_params:
        kp, np_ = w.shape
        # Constant index_map -> resident across batch tiles; Buffered(1) avoids
        # pointless double-buffering of blocks that are never re-fetched.
        in_specs.append(pl.BlockSpec((kp, np_), lambda i: (0, 0),
                                     pipeline_mode=pl.Buffered(1)))
        in_specs.append(pl.BlockSpec((1, np_), lambda i: (0, 0),
                                     pipeline_mode=pl.Buffered(1)))
        inputs.extend([w, b])

    flops = 2 * M_pad * sum(int(w.shape[0]) * int(w.shape[1])
                            for w, _ in padded_params)
    bytes_accessed = (M_pad * K0_pad * act_itemsize + wb_bytes
                      + M_pad * N_last_pad * out_itemsize)

    out_p = pl.pallas_call(
        _fused_mlp_kernel,
        out_shape=jax.ShapeDtypeStruct((M_pad, N_last_pad), out_dtype),
        grid_spec=pltpu.PrefetchScalarGridSpec(
            num_scalar_prefetch=0,
            grid=(M_pad // tm,),
            in_specs=in_specs,
            out_specs=pl.BlockSpec((tm, N_last_pad), lambda i: (i, 0)),
        ),
        compiler_params=pltpu.CompilerParams(
            dimension_semantics=("parallel",),
            vmem_limit_bytes=vmem_limit),
        cost_estimate=pl.CostEstimate(flops=flops, transcendentals=0,
                                      bytes_accessed=bytes_accessed),
    )(*inputs)

    if return_padded:
        return out_p   # skip the slice HBM pass when the consumer can take it
    return out_p[:M, :out_features]


if __name__ == "__main__":
    key = jax.random.PRNGKey(0)

    batch = 8
    input_size = 32
    hidden_size = 64
    output_size = 16
    num_layers = 3  # -> Linear(32,64)+ReLU, 2x [Linear(64,64)+ReLU], Linear(64,16)

    key, kx = jax.random.split(key)
    x = jax.random.normal(kx, (batch, input_size), jnp.float32)

    params = init_mlp_params(key, input_size, hidden_size, output_size, num_layers)
    padded_params = pad_mlp_params(params)  # bf16 weights, (1, N_pad) f32 biases

    fwd = jax.jit(fused_mlp_pallas,
                  static_argnames=("out_features", "return_padded"))
    out = fwd(x, padded_params, out_features=output_size)
    jax.block_until_ready(out)
    assert out.shape == (batch, output_size)

    # Matched-precision reference (bf16 inputs/weights, f32 accumulate) -- tight check.
    n = len(params)
    h = x.astype(jnp.bfloat16)
    ref_bf16 = None
    for i, (w, b) in enumerate(params):
        acc = jnp.dot(h, w.astype(jnp.bfloat16),
                      preferred_element_type=jnp.float32) + b
        if i < n - 1:
            h = jnp.maximum(acc, 0.0).astype(jnp.bfloat16)
        else:
            ref_bf16 = acc
    assert jnp.allclose(out, ref_bf16, atol=1e-3, rtol=1e-3)

    # Loose check vs. full-f32 reference (only bf16 quantization noise expected).
    ref_f32 = x
    for i, (w, b) in enumerate(params):
        ref_f32 = ref_f32 @ w + b
        if i < n - 1:
            ref_f32 = jnp.maximum(ref_f32, 0.0)
    assert jnp.allclose(out, ref_f32, atol=5e-2)

    print("KERNEL_OK")
</pallas_src>

<mosaic_0001>
module attributes {stable_mosaic.version = 11 : i64} {
  func.func @_fused_mlp_kernel(%arg0: i32, %arg1: memref<16x128xbf16, #tpu.memory_space<vmem>>, %arg2: memref<128x128xbf16, #tpu.memory_space<vmem>>, %arg3: memref<1x128xf32, #tpu.memory_space<vmem>>, %arg4: memref<128x128xbf16, #tpu.memory_space<vmem>>, %arg5: memref<1x128xf32, #tpu.memory_space<vmem>>, %arg6: memref<128x128xbf16, #tpu.memory_space<vmem>>, %arg7: memref<1x128xf32, #tpu.memory_space<vmem>>, %arg8: memref<128x128xbf16, #tpu.memory_space<vmem>>, %arg9: memref<1x128xf32, #tpu.memory_space<vmem>>, %arg10: memref<16x128xf32, #tpu.memory_space<vmem>>) attributes {dimension_semantics = [#tpu.dimension_semantics<parallel>], iteration_bounds = array<i64: 1>, scalar_prefetch = 0 : i64, scratch_operands = 0 : i64, tpu.core_type = #tpu.core_type<tc>, window_params = [{transform_indices = @transform_0, window_bounds = array<i64: 16, 128>}, {pipeline_mode = #tpu.pipeline_mode<synchronous>, transform_indices = @transform_1, window_bounds = array<i64: 128, 128>}, {pipeline_mode = #tpu.pipeline_mode<synchronous>, transform_indices = @transform_2, window_bounds = array<i64: 1, 128>}, {pipeline_mode = #tpu.pipeline_mode<synchronous>, transform_indices = @transform_3, window_bounds = array<i64: 128, 128>}, {pipeline_mode = #tpu.pipeline_mode<synchronous>, transform_indices = @transform_4, window_bounds = array<i64: 1, 128>}, {pipeline_mode = #tpu.pipeline_mode<synchronous>, transform_indices = @transform_5, window_bounds = array<i64: 128, 128>}, {pipeline_mode = #tpu.pipeline_mode<synchronous>, transform_indices = @transform_6, window_bounds = array<i64: 1, 128>}, {pipeline_mode = #tpu.pipeline_mode<synchronous>, transform_indices = @transform_7, window_bounds = array<i64: 128, 128>}, {pipeline_mode = #tpu.pipeline_mode<synchronous>, transform_indices = @transform_8, window_bounds = array<i64: 1, 128>}, {transform_indices = @transform_9, window_bounds = array<i64: 16, 128>}]} {
    %c0 = arith.constant 0 : index
    %c0_0 = arith.constant 0 : index
    %0 = vector.load %arg1[%c0, %c0_0] : memref<16x128xbf16, #tpu.memory_space<vmem>>, vector<16x128xbf16>
    %c0_1 = arith.constant 0 : index
    %c0_2 = arith.constant 0 : index
    %1 = vector.load %arg2[%c0_1, %c0_2] : memref<128x128xbf16, #tpu.memory_space<vmem>>, vector<128x128xbf16>
    %cst = arith.constant dense<0.000000e+00> : vector<16x128xf32>
    %2 = tpu.matmul %0, %1, %cst {dimension_numbers = #tpu.dot_dimension_numbers<[1], [0], [0], [1], [0, 0, 1, 1], [], []>} : vector<16x128xbf16>, vector<128x128xbf16>, vector<16x128xf32> -> vector<16x128xf32>
    %c0_3 = arith.constant 0 : index
    %c0_4 = arith.constant 0 : index
    %3 = vector.load %arg3[%c0_3, %c0_4] : memref<1x128xf32, #tpu.memory_space<vmem>>, vector<1x128xf32>
    %4 = vector.broadcast %3 : vector<1x128xf32> to vector<16x128xf32>
    %5 = arith.addf %2, %4 : vector<16x128xf32>
    %cst_5 = arith.constant 0.000000e+00 : f32
    %6 = vector.broadcast %cst_5 : f32 to vector<16x128xf32>
    %7 = arith.maximumf %5, %6 : vector<16x128xf32>
    %8 = arith.truncf %7 : vector<16x128xf32> to vector<16x128xbf16>
    %c0_6 = arith.constant 0 : index
    %c0_7 = arith.constant 0 : index
    %9 = vector.load %arg4[%c0_6, %c0_7] : memref<128x128xbf16, #tpu.memory_space<vmem>>, vector<128x128xbf16>
    %cst_8 = arith.constant dense<0.000000e+00> : vector<16x128xf32>
    %10 = tpu.matmul %8, %9, %cst_8 {dimension_numbers = #tpu.dot_dimension_numbers<[1], [0], [0], [1], [0, 0, 1, 1], [], []>} : vector<16x128xbf16>, vector<128x128xbf16>, vector<16x128xf32> -> vector<16x128xf32>
    %c0_9 = arith.constant 0 : index
    %c0_10 = arith.constant 0 : index
    %11 = vector.load %arg5[%c0_9, %c0_10] : memref<1x128xf32, #tpu.memory_space<vmem>>, vector<1x128xf32>
    %12 = vector.broadcast %11 : vector<1x128xf32> to vector<16x128xf32>
    %13 = arith.addf %10, %12 : vector<16x128xf32>
    %cst_11 = arith.constant 0.000000e+00 : f32
    %14 = vector.broadcast %cst_11 : f32 to vector<16x128xf32>
    %15 = arith.maximumf %13, %14 : vector<16x128xf32>
    %16 = arith.truncf %15 : vector<16x128xf32> to vector<16x128xbf16>
    %c0_12 = arith.constant 0 : index
    %c0_13 = arith.constant 0 : index
    %17 = vector.load %arg6[%c0_12, %c0_13] : memref<128x128xbf16, #tpu.memory_space<vmem>>, vector<128x128xbf16>
    %cst_14 = arith.constant dense<0.000000e+00> : vector<16x128xf32>
    %18 = tpu.matmul %16, %17, %cst_14 {dimension_numbers = #tpu.dot_dimension_numbers<[1], [0], [0], [1], [0, 0, 1, 1], [], []>} : vector<16x128xbf16>, vector<128x128xbf16>, vector<16x128xf32> -> vector<16x128xf32>
    %c0_15 = arith.constant 0 : index
    %c0_16 = arith.constant 0 : index
    %19 = vector.load %arg7[%c0_15, %c0_16] : memref<1x128xf32, #tpu.memory_space<vmem>>, vector<1x128xf32>
    %20 = vector.broadcast %19 : vector<1x128xf32> to vector<16x128xf32>
    %21 = arith.addf %18, %20 : vector<16x128xf32>
    %cst_17 = arith.constant 0.000000e+00 : f32
    %22 = vector.broadcast %cst_17 : f32 to vector<16x128xf32>
    %23 = arith.maximumf %21, %22 : vector<16x128xf32>
    %24 = arith.truncf %23 : vector<16x128xf32> to vector<16x128xbf16>
    %c0_18 = arith.constant 0 : index
    %c0_19 = arith.constant 0 : index
    %25 = vector.load %arg8[%c0_18, %c0_19] : memref<128x128xbf16, #tpu.memory_space<vmem>>, vector<128x128xbf16>
    %cst_20 = arith.constant dense<0.000000e+00> : vector<16x128xf32>
    %26 = tpu.matmul %24, %25, %cst_20 {dimension_numbers = #tpu.dot_dimension_numbers<[1], [0], [0], [1], [0, 0, 1, 1], [], []>} : vector<16x128xbf16>, vector<128x128xbf16>, vector<16x128xf32> -> vector<16x128xf32>
    %c0_21 = arith.constant 0 : index
    %c0_22 = arith.constant 0 : index
    %27 = vector.load %arg9[%c0_21, %c0_22] : memref<1x128xf32, #tpu.memory_space<vmem>>, vector<1x128xf32>
    %28 = vector.broadcast %27 : vector<1x128xf32> to vector<16x128xf32>
    %29 = arith.addf %26, %28 : vector<16x128xf32>
    %c0_23 = arith.constant 0 : index
    %c0_24 = arith.constant 0 : index
    %30 = vector.load %arg10[%c0_23, %c0_24] : memref<16x128xf32, #tpu.memory_space<vmem>>, vector<16x128xf32>
    tpu.vector_store %arg10[%c0_23, %c0_24], %29 {strides = array<i32>} : memref<16x128xf32, #tpu.memory_space<vmem>>, vector<16x128xf32>,
    return
  }
  func.func @transform_0(%arg0: i32) -> (i32, i32) {
    %c0_i32 = arith.constant 0 : i32
    %c0_i32_0 = arith.constant 0 : i32
    return %arg0, %c0_i32 : i32, i32
  }
  func.func @transform_1(%arg0: i32) -> (i32, i32) {
    %c0_i32 = arith.constant 0 : i32
    %c0_i32_0 = arith.constant 0 : i32
    %c0_i32_1 = arith.constant 0 : i32
    return %c0_i32, %c0_i32_0 : i32, i32
  }
  func.func @transform_2(%arg0: i32) -> (i32, i32) {
    %c0_i32 = arith.constant 0 : i32
    %c0_i32_0 = arith.constant 0 : i32
    %c0_i32_1 = arith.constant 0 : i32
    return %c0_i32, %c0_i32_0 : i32, i32
  }
  func.func @transform_3(%arg0: i32) -> (i32, i32) {
    %c0_i32 = arith.constant 0 : i32
    %c0_i32_0 = arith.constant 0 : i32
    %c0_i32_1 = arith.constant 0 : i32
    return %c0_i32, %c0_i32_0 : i32, i32
  }
  func.func @transform_4(%arg0: i32) -> (i32, i32) {
    %c0_i32 = arith.constant 0 : i32
    %c0_i32_0 = arith.constant 0 : i32
    %c0_i32_1 = arith.constant 0 : i32
    return %c0_i32, %c0_i32_0 : i32, i32
  }
  func.func @transform_5(%arg0: i32) -> (i32, i32) {
    %c0_i32 = arith.constant 0 : i32
    %c0_i32_0 = arith.constant 0 : i32
    %c0_i32_1 = arith.constant 0 : i32
    return %c0_i32, %c0_i32_0 : i32, i32
  }
  func.func @transform_6(%arg0: i32) -> (i32, i32) {
    %c0_i32 = arith.constant 0 : i32
    %c0_i32_0 = arith.constant 0 : i32
    %c0_i32_1 = arith.constant 0 : i32
    return %c0_i32, %c0_i32_0 : i32, i32
  }
  func.func @transform_7(%arg0: i32) -> (i32, i32) {
    %c0_i32 = arith.constant 0 : i32
    %c0_i32_0 = arith.constant 0 : i32
    %c0_i32_1 = arith.constant 0 : i32
    return %c0_i32, %c0_i32_0 : i32, i32
  }
  func.func @transform_8(%arg0: i32) -> (i32, i32) {
    %c0_i32 = arith.constant 0 : i32
    %c0_i32_0 = arith.constant 0 : i32
    %c0_i32_1 = arith.constant 0 : i32
    return %c0_i32, %c0_i32_0 : i32, i32
  }
  func.func @transform_9(%arg0: i32) -> (i32, i32) {
    %c0_i32 = arith.constant 0 : i32
    %c0_i32_0 = arith.constant 0 : i32
    return %arg0, %c0_i32 : i32, i32
  }
}

</mosaic_0001>

<bundles_post_ra>
// kernel: fused_mlp_pallas.1
= control target key start
LH: loop header
LB: loop body
LE: loop exit
PB: predicated region body
PF: predicated region fallthrough
CT: control target
= control target key end

     0   :  { %14 = vsyncpa [#allocation3], 0  ;;  %s985_s0 = inlined_call_operand.vmem [shape: bf16[16,128], index: 0, kind: input, shape index: {}]   ;;  %s986_s1 = inlined_call_operand.hbm [shape: bf16[128,128], index: 1, kind: input, shape index: {}]   ;;  %s987_s2 = inlined_call_operand.vmem [shape: f32[1,128], index: 2, kind: input, shape index: {}]   ;;  %s988_s3 = inlined_call_operand.hbm [shape: bf16[128,128], index: 3, kind: input, shape index: {}]   ;;  %s989_s4 = inlined_call_operand.vmem [shape: f32[1,128], index: 4, kind: input, shape index: {}]   ;;  %s990_s5 = inlined_call_operand.hbm [shape: bf16[128,128], index: 5, kind: input, shape index: {}]   ;;  %s991_s6 = inlined_call_operand.vmem [shape: f32[1,128], index: 6, kind: input, shape index: {}]   ;;  %s992_s7 = inlined_call_operand.hbm [shape: bf16[128,128], index: 7, kind: input, shape index: {}]   ;;  %s993_s8 = inlined_call_operand.vmem [shape: f32[1,128], index: 8, kind: input, shape index: {}]   ;;  %s994_s9 = inlined_call_operand.vmem [shape: f32[16,128], index: 9, kind: output, shape index: {}]  }
   0x1   :  { %15 = vsyncpa [#allocation5], 0 }
   0x2   :  { %16 = vsyncpa [#allocation8], 0  ;;  %s842_s30 = smov [#allocation4]   ;;  %s843_s11 = smov [#allocation2]  }
   0x3   :  { %s38_s10 = sshll.u32 %s842_s30, 4  ;;  %s24_s12 = sshll.u32 %s843_s11, 4  ;;  %s39_s10 = int_to_ptr.vmem [resolvable:$true] %s38_s10  ;;  %s25_s12 = int_to_ptr.vmem [resolvable:$true] %s24_s12 }
   0x4   :  { %s764_s13 = scalar_lea.vmem %s39_s10, 1024  ;;  %p769_p1 = scmp.lt.s32.totalorder %s39_s10, %s39_s10 }
   0x5   :  { %p765_p0 = scmp.ne.s32.totalorder %s39_s10, %s764_s13  ;;  %p770_p2 = scmp.lt.s32.totalorder %s764_s13, %s764_s13 }
   0x7   :  { %p771_p3 = por %p770_p2, %p769_p1 }
   0x9   :  { %p772_p4 = pnand %p771_p3, %p765_p0 }
   0xb   :  { %775 = shalt.err (!%p772_p4)
}
   0xc   :  { %s844_s14 = smov 64   ;;  %s845_s15 = smov 4  }
   0xd   :  { %44 = dma.hbm_to_vmem [thread:$0]  %s988_s3, 1024, %s39_s10, [#allocation5], %s844_s14, %s844_s14, %s845_s15  }
   0xe   :  { %s784_s18 = scalar_lea.vmem %s25_s12, 1024  ;;  %p789_p6 = scmp.lt.s32.totalorder %s25_s12, %s25_s12 }
   0xf   :  { %p785_p5 = scmp.ne.s32.totalorder %s25_s12, %s784_s18  ;;  %p790_p7 = scmp.lt.s32.totalorder %s784_s18, %s784_s18 }
  0x11   :  { %p791_p8 = por %p790_p7, %p789_p6 }
  0x13   :  { %p792_p9 = pnand %p791_p8, %p785_p5 }
  0x15   :  { %795 = shalt.err (!%p792_p9)
}
  0x16   :  { %30 = dma.hbm_to_vmem [thread:$0]  %s986_s1, 1024, %s25_s12, [#allocation3], %s844_s14, %s844_s14, %s845_s15  }
  0x17   :  { %s846_s21 = smov [#allocation6]   ;;  %s847_s23 = smov [#allocation7]  }
  0x18   :  { %s52_s22 = sshll.u32 %s846_s21, 4  ;;  %s66_s24 = sshll.u32 %s847_s23, 4  ;;  %s53_s22 = int_to_ptr.vmem [resolvable:$true] %s52_s22  ;;  %s67_s24 = int_to_ptr.vmem [resolvable:$true] %s66_s24 }
  0x19   :  { %s804_s3 = scalar_lea.vmem %s53_s22, 1024  ;;  %p809_p11 = scmp.lt.s32.totalorder %s53_s22, %s53_s22 }
  0x1a   :  { %p805_p10 = scmp.ne.s32.totalorder %s53_s22, %s804_s3  ;;  %p810_p12 = scmp.lt.s32.totalorder %s804_s3, %s804_s3 }
  0x1c   :  { %p811_p13 = por %p810_p12, %p809_p11 }
  0x1e   :  { %p812_p0 = pnand %p811_p13, %p805_p10 }
  0x20   :  { %815 = shalt.err (!%p812_p0)
}
  0x21   :  { %58 = dma.hbm_to_vmem [thread:$0]  %s990_s5, 1024, %s53_s22, [#allocation5], %s844_s14, %s844_s14, %s845_s15  }
  0x22   :  { %s824_s1 = scalar_lea.vmem %s67_s24, 1024  ;;  %p829_p2 = scmp.lt.s32.totalorder %s67_s24, %s67_s24 }
  0x23   :  { %p825_p1 = scmp.ne.s32.totalorder %s67_s24, %s824_s1  ;;  %p830_p3 = scmp.lt.s32.totalorder %s824_s1, %s824_s1 }
  0x25   :  { %p831_p4 = por %p830_p3, %p829_p2 }
  0x27   :  { %p832_p5 = pnand %p831_p4, %p825_p1 }
  0x29   :  { %835 = shalt.err (!%p832_p5)
}
  0x2a   :  { %72 = dma.hbm_to_vmem [thread:$0]  %s992_s7, 1024, %s67_s24, [#allocation8], %s844_s14, %s844_s14, %s845_s15  }
  0x2b   :  { %836 = dma.done.wait [#allocation3], 1024  }
  0x2c   :  { %837 = vsyncadd [#allocation3], 4294966272 }
  0x2d   :  { %838 = dma.done.wait [#allocation5], 2048  }
  0x2e   :  { %839 = vsyncadd [#allocation5], 4294965248 }
  0x2f   :  { %840 = dma.done.wait [#allocation8], 1024  }
  0x30   :  { %841 = vsyncadd [#allocation8], 4294966272  ;;  %v848_v0 = vmov 0.0   ;;  %vm849_vm0 = vmmov 0   ;;  %v723_v1 = vld [vmem:[#allocation2 + $0x38] sm:$0xff]   ;;  %v724_v2 = vld [vmem:[#allocation2 + $0x30] sm:$0xff]  }
  0x31   :  { %635 = vmatprep.subr.bf16.mxu0 %v848_v0  ;;  %651 = vmatprep.mubr.msk.bf16.mxu0 %vm849_vm0, %v848_v0  ;;  %v725_v3 = vld [vmem:[#allocation2 + $0x28] sm:$0xff]   ;;  %v732_v4 = vld [vmem:[#allocation4 + $0x38] sm:$0xff]   ;;  %v726_v5 = vld [vmem:[#allocation2 + $0x20] sm:$0xff]  }
  0x32   :  { %655 = vmatprep.subr.bf16.mxu1 %v848_v0  ;;  %671 = vmatprep.mubr.msk.bf16.mxu1 %vm849_vm0, %v848_v0  ;;  %v733_v6 = vld [vmem:[#allocation4 + $0x30] sm:$0xff]   ;;  %v727_v7 = vld [vmem:[#allocation2 + $0x18] sm:$0xff]   ;;  %v734_v8 = vld [vmem:[#allocation4 + $0x28] sm:$0xff]  }
  0x33   :  { %636 = vmatpush3.bf16.msra.mxu0 %v723_v1  ;;  %656 = vmatpush3.bf16.msra.mxu1 %v732_v4  ;;  %v728_v9 = vld [vmem:[#allocation2 + $0x10] sm:$0xff]   ;;  %v735_v10 = vld [vmem:[#allocation4 + $0x20] sm:$0xff]   ;;  %v729_v11 = vld [vmem:[#allocation2 + $0x8] sm:$0xff]  }
  0x34   :  { %637 = vmatprep.subr.bf16.mxu0 %v848_v0  ;;  %657 = vmatprep.subr.bf16.mxu1 %v848_v0  ;;  %v736_v12 = vld [vmem:[#allocation4 + $0x18] sm:$0xff]   ;;  %v730_v13 = vld [vmem:[#allocation2] sm:$0xff]   ;;  %v737_v15 = vld [vmem:[#allocation4 + $0x10] sm:$0xff]  }
  0x35   :  { %v731_v14 = vld [vmem:[%s985_s0] sm:$0xff]   ;;  %v738_v16 = vld [vmem:[#allocation4 + $0x8] sm:$0xff]   ;;  %v740_v18 = vld [vmem:[#allocation6 + $0x38] sm:$0xff]  }
  0x36   :  { %v739_v17 = vld [vmem:[#allocation4] sm:$0xff]   ;;  %v741_v19 = vld [vmem:[#allocation6 + $0x30] sm:$0xff]   ;;  %v742_v20 = vld [vmem:[#allocation6 + $0x28] sm:$0xff]  }
  0x37   :  { %638 = vmatpush3.bf16.msra.mxu0 %v724_v2  ;;  %658 = vmatpush3.bf16.msra.mxu1 %v733_v6  ;;  %v743_v21 = vld [vmem:[#allocation6 + $0x20] sm:$0xff]   ;;  %v744_v22 = vld [vmem:[#allocation6 + $0x18] sm:$0xff]   ;;  %v745_v33 = vld [vmem:[#allocation6 + $0x10] sm:$0xff]  }
  0x38   :  { %639 = vmatprep.subr.bf16.mxu0 %v848_v0  ;;  %659 = vmatprep.subr.bf16.mxu1 %v848_v0  ;;  %v562_v23 = vld [vmem:[%s987_s2] ss:$0 sm:$0xff]  ;;  %v746_v34 = vld [vmem:[#allocation6 + $0x8] sm:$0xff]   ;;  %v748_v36 = vld [vmem:[#allocation7 + $0x38] sm:$0xff]  }
  0x39   :  { %v747_v35 = vld [vmem:[#allocation6] sm:$0xff]   ;;  %v749_v37 = vld [vmem:[#allocation7 + $0x30] sm:$0xff]   ;;  %v750_v38 = vld [vmem:[#allocation7 + $0x28] sm:$0xff]  }
  0x3a   :  { %v751_v39 = vld [vmem:[#allocation7 + $0x20] sm:$0xff]   ;;  %v752_v40 = vld [vmem:[#allocation7 + $0x18] sm:$0xff]   ;;  %v753_v51 = vld [vmem:[#allocation7 + $0x10] sm:$0xff]  }
  0x3b   :  { %640 = vmatpush3.bf16.msra.mxu0 %v725_v3  ;;  %660 = vmatpush3.bf16.msra.mxu1 %v734_v8  ;;  %v572_v41 = vld [vmem:[%s989_s4] ss:$0 sm:$0xff]  ;;  %v754_v52 = vld [vmem:[#allocation7 + $0x8] sm:$0xff]  }
  0x3c   :  { %641 = vmatprep.subr.bf16.mxu0 %v848_v0  ;;  %661 = vmatprep.subr.bf16.mxu1 %v848_v0  ;;  %v755_v53 = vld [vmem:[#allocation7] sm:$0xff]  }
  0x3d   :  { %v581_v54 = vld [vmem:[%s991_s6] ss:$0 sm:$0xff] }
  0x3f   :  { %642 = vmatpush3.bf16.msra.mxu0 %v726_v5  ;;  %662 = vmatpush3.bf16.msra.mxu1 %v735_v10 }
  0x40   :  { %643 = vmatprep.subr.bf16.mxu0 %v848_v0  ;;  %663 = vmatprep.subr.bf16.mxu1 %v848_v0 }
  0x43   :  { %644 = vmatpush3.bf16.msra.mxu0 %v727_v7  ;;  %664 = vmatpush3.bf16.msra.mxu1 %v736_v12 }
  0x44   :  { %645 = vmatprep.subr.bf16.mxu0 %v848_v0  ;;  %665 = vmatprep.subr.bf16.mxu1 %v848_v0 }
  0x47   :  { %646 = vmatpush3.bf16.msra.mxu0 %v728_v9  ;;  %666 = vmatpush3.bf16.msra.mxu1 %v737_v15 }
  0x48   :  { %647 = vmatprep.subr.bf16.mxu0 %v848_v0  ;;  %667 = vmatprep.subr.bf16.mxu1 %v848_v0 }
  0x4b   :  { %648 = vmatpush3.bf16.msra.mxu0 %v729_v11  ;;  %668 = vmatpush3.bf16.msra.mxu1 %v738_v16 }
  0x4c   :  { %649 = vmatprep.subr.bf16.mxu0 %v848_v0  ;;  %669 = vmatprep.subr.bf16.mxu1 %v848_v0 }
  0x4f   :  { %650 = vmatpush3.bf16.msra.mxu0 %v730_v13  ;;  %670 = vmatpush3.bf16.msra.mxu1 %v739_v17 }
  0x50   :  { %675 = vmatprep.subr.bf16.mxu0 %v848_v0  ;;  %695 = vmatprep.subr.bf16.mxu1 %v848_v0 }
  0x52   :  { %652 = vmatmul.mubr.bf16.vlgmr.msra.gmra.mxu0 %v731_v14 }
  0x53   :  { %691 = vmatprep.mubr.msk.bf16.mxu0 %vm849_vm0, %v848_v0  ;;  %676 = vmatpush3.bf16.msra.mxu0 %v740_v18 }
  0x54   :  { %677 = vmatprep.subr.bf16.mxu0 %v848_v0 }
  0x57   :  { %678 = vmatpush3.bf16.msra.mxu0 %v741_v19 }
  0x58   :  { %679 = vmatprep.subr.bf16.mxu0 %v848_v0 }
  0x5b   :  { %680 = vmatpush3.bf16.msra.mxu0 %v742_v20 }
  0x5c   :  { %681 = vmatprep.subr.bf16.mxu0 %v848_v0 }
  0x5f   :  { %682 = vmatpush3.bf16.msra.mxu0 %v743_v21 }
  0x60   :  { %683 = vmatprep.subr.bf16.mxu0 %v848_v0 }
  0x63   :  { %684 = vmatpush3.bf16.msra.mxu0 %v744_v22 }
  0x64   :  { %685 = vmatprep.subr.bf16.mxu0 %v848_v0 }
  0x67   :  { %686 = vmatpush3.bf16.msra.mxu0 %v745_v33 }
  0x68   :  { %687 = vmatprep.subr.bf16.mxu0 %v848_v0 }
  0x6b   :  { %688 = vmatpush3.bf16.msra.mxu0 %v746_v34 }
  0x6c   :  { %689 = vmatprep.subr.bf16.mxu0 %v848_v0 }
  0x6f   :  { %690 = vmatpush3.bf16.msra.mxu0 %v747_v35 }
 0x112   :  { %v201_v24 = vpop.f32.mrf.mxu0 }
 0x113   :  { %v202_v26 = vadd.f32 %v562_v23, %v201_v24 }
 0x114   :  { %v653_v25 = vpop.f32.mrf.mxu0 }
 0x115   :  { %v208_v30 = vmax.f32 %v202_v26, 0.0 }
 0x116   :  { %v204_v27 = vpop.f32.mrf.mxu0 }
 0x117   :  { %v205_v28 = vadd.f32 %v562_v23, %v204_v27 }
 0x118   :  { %v654_v29 = vpop.f32.mrf.mxu0 }
 0x119   :  { %v209_v31 = vmax.f32 %v205_v28, 0.0 }
 0x11b   :  { %v210_v32 = vpack.c.bf16 %v209_v31, %v208_v30 }
 0x11d   :  { %672 = vmatmul.mubr.bf16.vlgmr.msra.gmra.mxu1 %v210_v32 }
 0x11e   :  { %711 = vmatprep.mubr.msk.bf16.mxu1 %vm849_vm0, %v848_v0  ;;  %696 = vmatpush3.bf16.msra.mxu1 %v748_v36 }
 0x11f   :  { %697 = vmatprep.subr.bf16.mxu1 %v848_v0 }
 0x122   :  { %698 = vmatpush3.bf16.msra.mxu1 %v749_v37 }
 0x123   :  { %699 = vmatprep.subr.bf16.mxu1 %v848_v0 }
 0x126   :  { %700 = vmatpush3.bf16.msra.mxu1 %v750_v38 }
 0x127   :  { %701 = vmatprep.subr.bf16.mxu1 %v848_v0 }
 0x12a   :  { %702 = vmatpush3.bf16.msra.mxu1 %v751_v39 }
 0x12b   :  { %703 = vmatprep.subr.bf16.mxu1 %v848_v0 }
 0x12e   :  { %704 = vmatpush3.bf16.msra.mxu1 %v752_v40 }
 0x12f   :  { %705 = vmatprep.subr.bf16.mxu1 %v848_v0 }
 0x132   :  { %706 = vmatpush3.bf16.msra.mxu1 %v753_v51 }
 0x133   :  { %707 = vmatprep.subr.bf16.mxu1 %v848_v0 }
 0x136   :  { %708 = vmatpush3.bf16.msra.mxu1 %v754_v52 }
 0x137   :  { %709 = vmatprep.subr.bf16.mxu1 %v848_v0  ;;  %v590_v0 = vld [vmem:[%s993_s8] ss:$0 sm:$0xff] }
 0x13a   :  { %710 = vmatpush3.bf16.msra.mxu1 %v755_v53 }
 0x1dd   :  { %v316_v42 = vpop.f32.mrf.mxu1 }
 0x1de   :  { %v317_v44 = vadd.f32 %v572_v41, %v316_v42 }
 0x1df   :  { %v673_v43 = vpop.f32.mrf.mxu1 }
 0x1e0   :  { %v323_v48 = vmax.f32 %v317_v44, 0.0 }
 0x1e1   :  { %v319_v45 = vpop.f32.mrf.mxu1 }
 0x1e2   :  { %v320_v46 = vadd.f32 %v572_v41, %v319_v45 }
 0x1e3   :  { %v674_v47 = vpop.f32.mrf.mxu1 }
 0x1e4   :  { %v324_v49 = vmax.f32 %v320_v46, 0.0 }
 0x1e6   :  { %v325_v50 = vpack.c.bf16 %v324_v49, %v323_v48 }
 0x1e8   :  { %692 = vmatmul.mubr.bf16.vlgmr.msra.gmra.mxu0 %v325_v50 }
 0x2a8   :  { %v431_v55 = vpop.f32.mrf.mxu0 }
 0x2a9   :  { %v432_v57 = vadd.f32 %v581_v54, %v431_v55 }
 0x2aa   :  { %v693_v56 = vpop.f32.mrf.mxu0 }
 0x2ab   :  { %v438_v61 = vmax.f32 %v432_v57, 0.0 }
 0x2ac   :  { %v434_v58 = vpop.f32.mrf.mxu0 }
 0x2ad   :  { %v435_v59 = vadd.f32 %v581_v54, %v434_v58 }
 0x2ae   :  { %v694_v60 = vpop.f32.mrf.mxu0 }
 0x2af   :  { %v439_v62 = vmax.f32 %v435_v59, 0.0 }
 0x2b1   :  { %v440_v63 = vpack.c.bf16 %v439_v62, %v438_v61 }
 0x2b3   :  { %712 = vmatmul.mubr.bf16.vlgmr.msra.gmra.mxu1 %v440_v63 }
 0x373   :  { %v546_v1 = vpop.f32.mrf.mxu1 }
 0x374   :  { %v547_v2 = vadd.f32 %v590_v0, %v546_v1 }
 0x375   :  { %v713_v3 = vpop.f32.mrf.mxu1 }
 0x376   :  { %553 = vst [vmem:[%s994_s9] sm:$0xff] %v547_v2 }
 0x377   :  { %v549_v4 = vpop.f32.mrf.mxu1 }
 0x378   :  { %v550_v5 = vadd.f32 %v590_v0, %v549_v4 }
 0x379   :  { %v714_v6 = vpop.f32.mrf.mxu1 }
 0x37a   :  { %554 = vst [vmem:[%s994_s9 + $0x8] sm:$0xff] %v550_v5 }
 0x37b   :  { %559 = vsyncpa [#allocation3], 1 }
 0x37c   :  { %560 = vsyncpa [#allocation5], 1 }
 0x37d   :  { %561 = vsyncpa [#allocation8], 1 }

</bundles_post_ra>
